<compile_context>
chip_gen: v7x
topology: tpu7x:2x2x1
jax: 0.10.0
libtpu: 0.0.40
codegen_flags: <defaults>
</compile_context>

<pallas_src>
import functools

import jax
import jax.numpy as jnp
import numpy as np
from jax.experimental import pallas as pl
from jax.experimental.pallas import tpu as pltpu


def _inverter_kernel(zr_ref, zi_ref, a2t_ref, b2t_ref, c2t_ref, d2t_ref,
                     w1l_ref, w1r_ref, o_ref, *, tb, n1, n2):
    """One grid step = TB batch elements of the learnable 2D inverse Fourier."""
    zr = zr_ref[...]                      # (tb*n1, n2) bf16, real parts
    zi = zi_ref[...]                      # (tb*n1, n2) bf16, imag parts

    # ---- linear2 (along n2), quadrant-split weights: no concats/lane slices.
    #   yr = zr @ W2[:n2,:n2]^T + zi @ W2[:n2,n2:]^T
    #   yi = zr @ W2[n2:,:n2]^T + zi @ W2[n2:,n2:]^T
    yr = (jnp.dot(zr, a2t_ref[...], preferred_element_type=jnp.float32)
          + jnp.dot(zi, b2t_ref[...], preferred_element_type=jnp.float32))
    yi = (jnp.dot(zr, c2t_ref[...], preferred_element_type=jnp.float32)
          + jnp.dot(zi, d2t_ref[...], preferred_element_type=jnp.float32))

    # ---- inherent relayout between the two 1D transforms:
    # per-element transpose (tb, n1, n2) -> (tb, n2, n1), batch stays on rows.
    yrt = yr.reshape(tb, n1, n2).swapaxes(-1, -2).reshape(tb * n2, n1)
    yit = yi.reshape(tb, n1, n2).swapaxes(-1, -2).reshape(tb * n2, n1)
    yrt = yrt.astype(jnp.bfloat16)
    yit = yit.astype(jnp.bfloat16)

    # ---- linear1 (along n1), transposed/batched form, fused real|imag output:
    #   [out_r^T | out_i^T] = yr^T @ (W1[:, :n1])^T + yi^T @ (W1[:, n1:])^T
    rt = (jnp.dot(yrt, w1l_ref[...], preferred_element_type=jnp.float32)
          + jnp.dot(yit, w1r_ref[...], preferred_element_type=jnp.float32))

    # (tb*n2, 2*n1) -> (2*n1, tb*n2): lane dim of the store is tb*n2 (dense).
    o_ref[...] = jnp.transpose(rt).astype(o_ref.dtype)


def _choose_tb(batch, n1, n2, budget_bytes):
    """Largest batch tile that fits VMEM while keeping >= 2 grid steps."""
    def step_bytes(tb):
        in_blk = 2 * tb * n1 * n2 * 2                    # zr + zi (bf16)
        out_blk = 2 * n1 * tb * n2 * 4                   # f32 output block
        weights = (4 * n2 * n2 + 2 * n1 * 2 * n1) * 2    # bf16, resident
        interm = 40 * tb * n1 * n2                       # yr/yi/relayout/rt (f32)
        return 2 * (in_blk + out_blk) + 2 * weights + interm

    best = 1
    for d in sorted((d for d in range(1, batch + 1) if batch % d == 0),
                    reverse=True):
        if batch >= 2 and batch // d < 2:
            continue                                     # keep both v7x TCs busy
        if step_bytes(d) <= budget_bytes:
            best = d
            break
    return best, step_bytes(best)


def learnable_inverter_fourier(y, mask, w1, w2, *, n):
    """JAX/Pallas equivalent of LearnableInverterFourier.forward(y).

    y    : (N, 2, m) measured k-space samples (real/imag channels).
    mask : (1, 1, n1, n2) boolean subsampling mask (only mask[0, 0] is used).
    w1   : (2*n1, 2*n1) weight of linear1 (acts along the n1 axis).
    w2   : (2*n2, 2*n2) weight of linear2 (acts along the n2 axis).
    n    : (n1, n2) image dimensions.  Returns (N, 2, n1, n2) float32.
    """
    n1, n2 = n
    N = y.shape[0]
    assert y.shape[1] == 2, "expected real/imag channel axis of size 2"
    assert n1 % 8 == 0 and n2 % 8 == 0, "n1, n2 must be multiples of 8"

    # ---- 1) fixed zero-filling (transpose of the subsampling operator).
    #   Data-dependent boolean-mask scatter -> static indices in the wrapper.
    mask2d = np.asarray(mask)[0, 0].astype(bool)
    idx = np.flatnonzero(mask2d.reshape(-1))
    assert y.shape[-1] == idx.size, "y last dim must equal number of mask entries"
    flat = jnp.zeros((N, 2, n1 * n2), jnp.bfloat16)
    flat = flat.at[..., idx].set(y.astype(jnp.bfloat16))
    z = flat.reshape(N, 2, n1, n2)
    zr = z[:, 0].reshape(N * n1, n2)                     # batch folded into rows
    zi = z[:, 1].reshape(N * n1, n2)

    # ---- 2) split the learnable weights (static, once) -> resident VMEM blocks.
    w1f = jnp.asarray(w1, jnp.float32)
    w2f = jnp.asarray(w2, jnp.float32)
    a2t = w2f[:n2, :n2].T.astype(jnp.bfloat16)           # (n2, n2)
    b2t = w2f[:n2, n2:].T.astype(jnp.bfloat16)
    c2t = w2f[n2:, :n2].T.astype(jnp.bfloat16)
    d2t = w2f[n2:, n2:].T.astype(jnp.bfloat16)
    w1l = w1f[:, :n1].T.astype(jnp.bfloat16)             # (n1, 2*n1)
    w1r = w1f[:, n1:].T.astype(jnp.bfloat16)             # (n1, 2*n1)

    # ---- 3) batch tile + VMEM budget (intermediates included, generation-safe cap).
    try:
        cap = int(pltpu.get_tpu_info().vmem_capacity_bytes)
        budget = min(int(cap * 0.75), 96 << 20)          # v7x: ~48MiB, v5e/v6e: 96MiB
    except Exception:
        budget = 48 << 20                                # safe on every generation
    tb, step_bytes = _choose_tb(N, n1, n2, budget)
    vmem_limit = int(min(max(2 * step_bytes + (4 << 20), 16 << 20), budget))

    flops = N * (8 * n1 * n2 * n2 + 8 * n1 * n1 * n2)
    bytes_accessed = (2 * N * n1 * n2 * 2                # zr, zi in
                      + (4 * n2 * n2 + 4 * n1 * n1) * 2  # weights
                      + 2 * n1 * N * n2 * 4)             # output slab
    cost = pl.CostEstimate(flops=flops, transcendentals=0,
                           bytes_accessed=bytes_accessed)

    kernel = functools.partial(_inverter_kernel, tb=tb, n1=n1, n2=n2)
    out_t = pl.pallas_call(
        kernel,
        out_shape=jax.ShapeDtypeStruct((2 * n1, N * n2), jnp.float32),
        grid=(N // tb,),
        in_specs=[
            pl.BlockSpec((tb * n1, n2), lambda g: (g, 0)),       # zr block
            pl.BlockSpec((tb * n1, n2), lambda g: (g, 0)),       # zi block
            pl.BlockSpec((n2, n2), lambda g: (0, 0)),            # W2 quadrants
            pl.BlockSpec((n2, n2), lambda g: (0, 0)),            #  (resident)
            pl.BlockSpec((n2, n2), lambda g: (0, 0)),
            pl.BlockSpec((n2, n2), lambda g: (0, 0)),
            pl.BlockSpec((n1, 2 * n1), lambda g: (0, 0)),        # W1 halves
            pl.BlockSpec((n1, 2 * n1), lambda g: (0, 0)),        #  (resident)
        ],
        out_specs=pl.BlockSpec((2 * n1, tb * n2), lambda g: (0, g)),
        compiler_params=pltpu.CompilerParams(
            dimension_semantics=("parallel",),
            vmem_limit_bytes=vmem_limit,
        ),
        cost_estimate=cost,
    )(zr, zi, a2t, b2t, c2t, d2t, w1l, w1r)

    # (2*n1, N*n2) transposed slab -> (N, 2, n1, n2); cheap XLA ops outside kernel.
    out = out_t.reshape(2, n1, N, n2).transpose(2, 0, 1, 3)
    return out


def _inverse_fourier_matrix(n):
    """Real 2n x 2n matrix [[Re, -Im], [Im, Re]] of the ortho inverse DFT,
    exactly as LearnableFourier1D(n, inverse=True) initializes its Linear."""
    eye = np.eye(n, dtype=np.complex64)
    mat = np.fft.ifft(np.fft.ifftshift(eye, axes=-1), axis=-2, norm="ortho")
    re = mat.real.astype(np.float32)
    im = mat.imag.astype(np.float32)
    return np.block([[re, -im], [im, re]]).astype(np.float32)


def _reference_forward(y, mask, w1, w2, n):
    """Pure-JAX mirror of LearnableInverterFourier.forward (torch op order)."""
    n1, n2 = n
    N = y.shape[0]
    mask2d = np.asarray(mask)[0, 0].astype(bool)
    idx = np.flatnonzero(mask2d.reshape(-1))
    flat = jnp.zeros((N, 2, n1 * n2), jnp.float32).at[..., idx].set(
        y.astype(jnp.float32))
    x = flat.reshape(N, 2, n1, n2)
    hi = jax.lax.Precision.HIGHEST
    # linear2 (dim = -1)
    xv = jnp.concatenate([x[:, 0], x[:, 1]], axis=-1)                # (N, n1, 2n2)
    fv = jnp.einsum("bij,kj->bik", xv, w2, precision=hi)             # x_vec @ W2^T
    x = jnp.stack([fv[..., :n2], fv[..., n2:]], axis=1)              # (N, 2, n1, n2)
    # linear1 (dim = -2)
    xt = jnp.swapaxes(x, -1, -2)                                     # (N, 2, n2, n1)
    xv = jnp.concatenate([xt[:, 0], xt[:, 1]], axis=-1)              # (N, n2, 2n1)
    fv = jnp.einsum("bij,kj->bik", xv, w1, precision=hi)             # x_vec @ W1^T
    out = jnp.stack([fv[..., :n1], fv[..., n1:]], axis=1)            # (N, 2, n2, n1)
    return jnp.swapaxes(out, -1, -2)                                 # (N, 2, n1, n2)


if __name__ == "__main__":
    N = 16
    n1, n2 = 16, 16

    # Deterministic subsampling mask (only mask[0, 0] is used by the module).
    mask2d = np.zeros((n1, n2), dtype=bool)
    mask2d[:, ::2] = True
    mask2d[:, n2 // 2 - 2: n2 // 2 + 2] = True
    mask = mask2d[None, None]
    m = int(mask2d.sum())

    key = jax.random.PRNGKey(0)
    k_y, k_w1, k_w2 = jax.random.split(key, 3)

    # Learnable weights: ortho inverse-Fourier init + small noise (learnable=True).
    w1 = jnp.asarray(_inverse_fourier_matrix(n1)) + (
        1.0 / (np.sqrt(n1) * 16.0)) * jax.random.normal(k_w1, (2 * n1, 2 * n1),
                                                        dtype=jnp.float32)
    w2 = jnp.asarray(_inverse_fourier_matrix(n2)) + (
        1.0 / (np.sqrt(n2) * 16.0)) * jax.random.normal(k_w2, (2 * n2, 2 * n2),
                                                        dtype=jnp.float32)

    # Measured k-space samples, shape (N, 2, m): real/imag channels.
    y = jax.random.normal(k_y, (N, 2, m), dtype=jnp.float32)

    out = learnable_inverter_fourier(y, mask, w1, w2, n=(n1, n2))
    out = jax.block_until_ready(out)

    ref = _reference_forward(y, mask, w1, w2, (n1, n2))
    # bf16 operands with f32 accumulation -> a few parts in 1e3 of error.
    np.testing.assert_allclose(np.asarray(out), np.asarray(ref),
                               rtol=5e-2, atol=5e-2)
    print("KERNEL_OK")
</pallas_src>

<mosaic_0001>
module attributes {stable_mosaic.version = 11 : i64} {
  func.func @_inverter_kernel(%arg0: i32, %arg1: memref<128x16xbf16, #tpu.memory_space<vmem>>, %arg2: memref<128x16xbf16, #tpu.memory_space<vmem>>, %arg3: memref<16x16xbf16, #tpu.memory_space<vmem>>, %arg4: memref<16x16xbf16, #tpu.memory_space<vmem>>, %arg5: memref<16x16xbf16, #tpu.memory_space<vmem>>, %arg6: memref<16x16xbf16, #tpu.memory_space<vmem>>, %arg7: memref<16x32xbf16, #tpu.memory_space<vmem>>, %arg8: memref<16x32xbf16, #tpu.memory_space<vmem>>, %arg9: memref<32x128xf32, #tpu.memory_space<vmem>>) attributes {dimension_semantics = [#tpu.dimension_semantics<parallel>], iteration_bounds = array<i64: 2>, scalar_prefetch = 0 : i64, scratch_operands = 0 : i64, tpu.core_type = #tpu.core_type<tc>, window_params = [{transform_indices = @transform_0, window_bounds = array<i64: 128, 16>}, {transform_indices = @transform_1, window_bounds = array<i64: 128, 16>}, {pipeline_mode = #tpu.pipeline_mode<synchronous>, transform_indices = @transform_2, window_bounds = array<i64: 16, 16>}, {pipeline_mode = #tpu.pipeline_mode<synchronous>, transform_indices = @transform_3, window_bounds = array<i64: 16, 16>}, {pipeline_mode = #tpu.pipeline_mode<synchronous>, transform_indices = @transform_4, window_bounds = array<i64: 16, 16>}, {pipeline_mode = #tpu.pipeline_mode<synchronous>, transform_indices = @transform_5, window_bounds = array<i64: 16, 16>}, {pipeline_mode = #tpu.pipeline_mode<synchronous>, transform_indices = @transform_6, window_bounds = array<i64: 16, 32>}, {pipeline_mode = #tpu.pipeline_mode<synchronous>, transform_indices = @transform_7, window_bounds = array<i64: 16, 32>}, {transform_indices = @transform_8, window_bounds = array<i64: 32, 128>}]} {
    %c0 = arith.constant 0 : index
    %c0_0 = arith.constant 0 : index
    %0 = vector.load %arg1[%c0, %c0_0] : memref<128x16xbf16, #tpu.memory_space<vmem>>, vector<128x16xbf16>
    %c0_1 = arith.constant 0 : index
    %c0_2 = arith.constant 0 : index
    %1 = vector.load %arg2[%c0_1, %c0_2] : memref<128x16xbf16, #tpu.memory_space<vmem>>, vector<128x16xbf16>
    %c0_3 = arith.constant 0 : index
    %c0_4 = arith.constant 0 : index
    %2 = vector.load %arg3[%c0_3, %c0_4] : memref<16x16xbf16, #tpu.memory_space<vmem>>, vector<16x16xbf16>
    %cst = arith.constant dense<0.000000e+00> : vector<128x16xf32>
    %3 = tpu.matmul %0, %2, %cst {dimension_numbers = #tpu.dot_dimension_numbers<[1], [0], [0], [1], [0, 0, 1, 1], [], []>} : vector<128x16xbf16>, vector<16x16xbf16>, vector<128x16xf32> -> vector<128x16xf32>
    %c0_5 = arith.constant 0 : index
    %c0_6 = arith.constant 0 : index
    %4 = vector.load %arg4[%c0_5, %c0_6] : memref<16x16xbf16, #tpu.memory_space<vmem>>, vector<16x16xbf16>
    %cst_7 = arith.constant dense<0.000000e+00> : vector<128x16xf32>
    %5 = tpu.matmul %1, %4, %cst_7 {dimension_numbers = #tpu.dot_dimension_numbers<[1], [0], [0], [1], [0, 0, 1, 1], [], []>} : vector<128x16xbf16>, vector<16x16xbf16>, vector<128x16xf32> -> vector<128x16xf32>
    %6 = arith.addf %3, %5 : vector<128x16xf32>
    %c0_8 = arith.constant 0 : index
    %c0_9 = arith.constant 0 : index
    %7 = vector.load %arg5[%c0_8, %c0_9] : memref<16x16xbf16, #tpu.memory_space<vmem>>, vector<16x16xbf16>
    %cst_10 = arith.constant dense<0.000000e+00> : vector<128x16xf32>
    %8 = tpu.matmul %0, %7, %cst_10 {dimension_numbers = #tpu.dot_dimension_numbers<[1], [0], [0], [1], [0, 0, 1, 1], [], []>} : vector<128x16xbf16>, vector<16x16xbf16>, vector<128x16xf32> -> vector<128x16xf32>
    %c0_11 = arith.constant 0 : index
    %c0_12 = arith.constant 0 : index
    %9 = vector.load %arg6[%c0_11, %c0_12] : memref<16x16xbf16, #tpu.memory_space<vmem>>, vector<16x16xbf16>
    %cst_13 = arith.constant dense<0.000000e+00> : vector<128x16xf32>
    %10 = tpu.matmul %1, %9, %cst_13 {dimension_numbers = #tpu.dot_dimension_numbers<[1], [0], [0], [1], [0, 0, 1, 1], [], []>} : vector<128x16xbf16>, vector<16x16xbf16>, vector<128x16xf32> -> vector<128x16xf32>
    %11 = arith.addf %8, %10 : vector<128x16xf32>
    %12 = vector.shape_cast %6 : vector<128x16xf32> to vector<8x16x16xf32>
    %13 = tpu.transpose %12, [0, 2, 1] : vector<8x16x16xf32> -> vector<8x16x16xf32>
    %14 = vector.shape_cast %13 : vector<8x16x16xf32> to vector<128x16xf32>
    %15 = vector.shape_cast %11 : vector<128x16xf32> to vector<8x16x16xf32>
    %16 = tpu.transpose %15, [0, 2, 1] : vector<8x16x16xf32> -> vector<8x16x16xf32>
    %17 = vector.shape_cast %16 : vector<8x16x16xf32> to vector<128x16xf32>
    %18 = arith.truncf %14 : vector<128x16xf32> to vector<128x16xbf16>
    %19 = arith.truncf %17 : vector<128x16xf32> to vector<128x16xbf16>
    %c0_14 = arith.constant 0 : index
    %c0_15 = arith.constant 0 : index
    %20 = vector.load %arg7[%c0_14, %c0_15] : memref<16x32xbf16, #tpu.memory_space<vmem>>, vector<16x32xbf16>
    %cst_16 = arith.constant dense<0.000000e+00> : vector<128x32xf32>
    %21 = tpu.matmul %18, %20, %cst_16 {dimension_numbers = #tpu.dot_dimension_numbers<[1], [0], [0], [1], [0, 0, 1, 1], [], []>} : vector<128x16xbf16>, vector<16x32xbf16>, vector<128x32xf32> -> vector<128x32xf32>
    %c0_17 = arith.constant 0 : index
    %c0_18 = arith.constant 0 : index
    %22 = vector.load %arg8[%c0_17, %c0_18] : memref<16x32xbf16, #tpu.memory_space<vmem>>, vector<16x32xbf16>
    %cst_19 = arith.constant dense<0.000000e+00> : vector<128x32xf32>
    %23 = tpu.matmul %19, %22, %cst_19 {dimension_numbers = #tpu.dot_dimension_numbers<[1], [0], [0], [1], [0, 0, 1, 1], [], []>} : vector<128x16xbf16>, vector<16x32xbf16>, vector<128x32xf32> -> vector<128x32xf32>
    %24 = arith.addf %21, %23 : vector<128x32xf32>
    %25 = tpu.transpose %24, [1, 0] : vector<128x32xf32> -> vector<32x128xf32>
    %c0_20 = arith.constant 0 : index
    %c0_21 = arith.constant 0 : index
    %26 = vector.load %arg9[%c0_20, %c0_21] : memref<32x128xf32, #tpu.memory_space<vmem>>, vector<32x128xf32>
    tpu.vector_store %arg9[%c0_20, %c0_21], %25 {strides = array<i32>} : memref<32x128xf32, #tpu.memory_space<vmem>>, vector<32x128xf32>,
    return
  }
  func.func @transform_0(%arg0: i32) -> (i32, i32) {
    %c0_i32 = arith.constant 0 : i32
    %c0_i32_0 = arith.constant 0 : i32
    return %arg0, %c0_i32 : i32, i32
  }
  func.func @transform_1(%arg0: i32) -> (i32, i32) {
    %c0_i32 = arith.constant 0 : i32
    %c0_i32_0 = arith.constant 0 : i32
    return %arg0, %c0_i32 : i32, i32
  }
  func.func @transform_2(%arg0: i32) -> (i32, i32) {
    %c0_i32 = arith.constant 0 : i32
    %c0_i32_0 = arith.constant 0 : i32
    %c0_i32_1 = arith.constant 0 : i32
    return %c0_i32, %c0_i32_0 : i32, i32
  }
  func.func @transform_3(%arg0: i32) -> (i32, i32) {
    %c0_i32 = arith.constant 0 : i32
    %c0_i32_0 = arith.constant 0 : i32
    %c0_i32_1 = arith.constant 0 : i32
    return %c0_i32, %c0_i32_0 : i32, i32
  }
  func.func @transform_4(%arg0: i32) -> (i32, i32) {
    %c0_i32 = arith.constant 0 : i32
    %c0_i32_0 = arith.constant 0 : i32
    %c0_i32_1 = arith.constant 0 : i32
    return %c0_i32, %c0_i32_0 : i32, i32
  }
  func.func @transform_5(%arg0: i32) -> (i32, i32) {
    %c0_i32 = arith.constant 0 : i32
    %c0_i32_0 = arith.constant 0 : i32
    %c0_i32_1 = arith.constant 0 : i32
    return %c0_i32, %c0_i32_0 : i32, i32
  }
  func.func @transform_6(%arg0: i32) -> (i32, i32) {
    %c0_i32 = arith.constant 0 : i32
    %c0_i32_0 = arith.constant 0 : i32
    %c0_i32_1 = arith.constant 0 : i32
    return %c0_i32, %c0_i32_0 : i32, i32
  }
  func.func @transform_7(%arg0: i32) -> (i32, i32) {
    %c0_i32 = arith.constant 0 : i32
    %c0_i32_0 = arith.constant 0 : i32
    %c0_i32_1 = arith.constant 0 : i32
    return %c0_i32, %c0_i32_0 : i32, i32
  }
  func.func @transform_8(%arg0: i32) -> (i32, i32) {
    %c0_i32 = arith.constant 0 : i32
    %c0_i32_0 = arith.constant 0 : i32
    return %c0_i32, %arg0 : i32, i32
  }
}

</mosaic_0001>

<bundles_post_ra>
// kernel: tpu_custom_call.1
= control target key start
LH: loop header
LB: loop body
LE: loop exit
PB: predicated region body
PF: predicated region fallthrough
CT: control target
= control target key end

     0   :  { %13 = vsyncpa [#allocation3], 0  ;;  %s2629_s0 = inlined_call_operand.vmem [shape: bf16[256,16], index: 0, kind: input, shape index: {}]   ;;  %s2630_s1 = inlined_call_operand.vmem [shape: bf16[256,16], index: 1, kind: input, shape index: {}]   ;;  %s2631_s2 = inlined_call_operand.vmem [shape: bf16[16,16], index: 2, kind: input, shape index: {}]   ;;  %s2632_s3 = inlined_call_operand.vmem [shape: bf16[16,16], index: 3, kind: input, shape index: {}]   ;;  %s2633_s4 = inlined_call_operand.vmem [shape: bf16[16,16], index: 4, kind: input, shape index: {}]   ;;  %s2634_s5 = inlined_call_operand.vmem [shape: bf16[16,16], index: 5, kind: input, shape index: {}]   ;;  %s2635_s6 = inlined_call_operand.vmem [shape: bf16[16,32], index: 6, kind: input, shape index: {}]   ;;  %s2636_s7 = inlined_call_operand.vmem [shape: bf16[16,32], index: 7, kind: input, shape index: {}]   ;;  %s2637_s8 = inlined_call_operand.hbm [shape: f32[32,256], index: 8, kind: output, shape index: {}]  }
   0x1   :  { %15 = vsyncpa [#allocation3 + $0x1], 0  ;;  %s2402_s27 = smov 0   ;;  %s2404_s28 = smov 0  }
   0x2   :  { %s2406_s29 = smov 0   ;;  %s2408_s30 = smov 0  }
   0x3 LB: > { %s2423_s9 = sadd.s32 4294967295, %s2351_s30   ;;  %s1819_s10 = sadd.s32 4294967294, %s2351_s30   ;;  %s2351_s30 = sphi %s2408_s30, %s2643_s30   ;;  %s2347_s29 = sphi %s2406_s29, %s2642_s29   ;;  %s2343_s28 = sphi %s2404_s28, %s2641_s28   ;;  %s2339_s27 = sphi %s2402_s27, %s2640_s27  }
   0x4   : > { %s2427_s11 = sadd.s32 1, %s2351_s30   ;;  %s206_s12 = sadd.s32 1, %s2347_s29 }
   0x5   : > { %s203_s13 = ssub.s32 %s2351_s30, %s2427_s11  ;;  %p216_p0 = scmp.ne.s32.totalorder %s2347_s29, %s2343_s28 }
   0x6   : > { %p204_p1 = scmp.eq.s32.totalorder %s203_s13, 0  ;;  %p217_p2 = scmp.eq.s32.totalorder %s2423_s9, 1 }
   0x7   : > { %p222_p3 = scmp.ne.s32.totalorder %s2343_s28, %s2339_s27  ;;  %p223_p4 = scmp.eq.s32.totalorder %s1819_s10, 1 }
   0x8   : > { %s2438_s14 = scalar_select %p204_p1, %s2347_s29, %s206_s12  }
   0x9   : > { %p2440_p5 = por %p217_p2, %p216_p0  ;;  %p2444_p6 = por %p223_p4, %p222_p3 }
   0xa   : > { %p1822_p7 = scmp.ge.s32.totalorder %s2351_s30, 1  ;;  %p277_p8 = scmp.lt.s32.totalorder %s2351_s30, 3 }
   0xc   : > { %p278_p9 = pnand %p1822_p7, %p277_p8 }
   0xd   : > { %v2267_v0 = vld [vmem:[%s2632_s3] sm:$0xff] (!%p278_p9)   ;;  %s1824_s19 = sshll.u32 (!%p278_p9), %s2423_s9, 4  ;;  %vm411_vm0 = vcmask (!%p278_p9), 130048   ;;  %s1899_s12 = sshll.u32 (!%p278_p9), %s2423_s9, 7 }
   0xe   : > { %281 = sbr.rel (%p278_p9) target bundleno = 845 (0x34d), region = 52  ;;  %v2268_v1 = vld [vmem:[%s2631_s2] sm:$0xff] (!%p278_p9)   ;;  %p317_p10 = scmp.lt.s32.totalorder (!%p278_p9), %s1824_s19, 31  ;;  %1956 = vmatprep.subr.bf16.mxu1 (!%p278_p9), %v2267_v0 }
   0xf   : > { %v2271_v2 = vld [vmem:[%s2634_s5] sm:$0xff] (!%p278_p9)   ;;  %1957 = vmatpush3.bf16.msra.mxu1 (!%p278_p9), %v2267_v0  ;;  %1974 = vmatprep.subr.bf16.mxu0 (!%p278_p9), %v2268_v1  ;;  %s2586_s18 = scalar_lea.hbm (!%p278_p9), %s2637_s8, %s1899_s12  ;;  %s2353_s9 = smov (!%p278_p9), [#allocation2]  }
  0x10   : > { %1975 = vmatpush3.bf16.msra.mxu0 (!%p278_p9), %v2268_v1  ;;  %1992 = vmatprep.subr.bf16.mxu1 (!%p278_p9), %v2271_v2  ;;  %v2286_v4 = vld [vmem:[%s2633_s4] sm:$0xff] (!%p278_p9)   ;;  %s2293_s21 = sshll.u32 (!%p278_p9), %s2353_s9, 4  ;;  %s2294_s21 = int_to_ptr.vmem [resolvable:$false] %s2293_s21 }
  0x11   : > { %v2287_v20 = vld [vmem:[%s2636_s7] sm:$0xff] (!%p278_p9)   ;;  %s2295_s22 = scalar_lea.vmem (!%p278_p9), %s2294_s21, 1024 }
  0x12   : > { %2028 = vmatprep.subr.bf16.mxu0 (!%p278_p9), %v2287_v20 }
  0x15   : > { %s2645_s19 = smov (!%p317_p10, %s1824_s19), 31 }
  0x16   : > { %s1825_s24 = sshll.u32 %s2645_s19, 2 }
  0x17   : > { %s2463_s10 = scalar_lea.vmem %s2630_s1, %s1825_s24  ;;  %s2468_s17 = scalar_lea.vmem %s2629_s0, %s1825_s24 }
  0x18   : > { %v2269_v3 = vld [vmem:[%s2463_s10] sm:$0xff]   ;;  %v2272_v6 = vld [vmem:[%s2463_s10 + $0x8] sm:$0xff]   ;;  %v2274_v8 = vld [vmem:[%s2463_s10 + $0x10] sm:$0xff]   ;;  %s313_s24 = sand.u32 1, %s2343_s28  }
  0x19   : > { %v2270_v5 = vld [vmem:[%s2468_s17] sm:$0xff]   ;;  %1958 = vmatprep.mubr.msk.bf16.mxu1 %vm411_vm0, %v2269_v3  ;;  %v2273_v7 = vld [vmem:[%s2468_s17 + $0x8] sm:$0xff]   ;;  %v2275_v9 = vld [vmem:[%s2468_s17 + $0x10] sm:$0xff]   ;;  %s1823_s25 = sshll.u32 %s313_s24, 5  ;;  %s2588_s19 = scalar_lea.sflag [#allocation3], %s313_s24 }
  0x1a   : > { %1976 = vmatprep.mubr.msk.bf16.mxu0 %vm411_vm0, %v2270_v5  ;;  %1959 = vmatmul.mubr.msk.bf16.vlgmr.msra.gmra.mrb[0].mxu1 %vm411_vm0, %v2272_v6  ;;  %v2276_v10 = vld [vmem:[%s2463_s10 + $0x18] sm:$0xff]   ;;  %v2278_v12 = vld [vmem:[%s2463_s10 + $0x20] sm:$0xff]   ;;  %v2280_v14 = vld [vmem:[%s2463_s10 + $0x28] sm:$0xff]   ;;  %s315_s26 = scalar_lea.vmem [#allocation2], %s1823_s25 }
  0x1b   : > { %1977 = vmatmul.mubr.msk.bf16.vlgmr.msra.gmra.mrb[0].mxu0 %vm411_vm0, %v2273_v7  ;;  %1993 = vmatpush3.bf16.msra.mxu1 %v2271_v2  ;;  %v2277_v11 = vld [vmem:[%s2468_s17 + $0x18] sm:$0xff]   ;;  %v2279_v13 = vld [vmem:[%s2468_s17 + $0x20] sm:$0xff]   ;;  %v2281_v15 = vld [vmem:[%s2468_s17 + $0x28] sm:$0xff]  }
  0x1c   : > { %1962 = vmatprep.mubr.msk.bf16.mxu1 %vm411_vm0, %v2274_v8  ;;  %2010 = vmatprep.subr.bf16.mxu1 %v2286_v4  ;;  %v2282_v16 = vld [vmem:[%s2463_s10 + $0x30] sm:$0xff]   ;;  %v2284_v18 = vld [vmem:[%s2463_s10 + $0x38] sm:$0xff]   ;;  %s1745_s10 = sshll.u32 %s315_s26, 4  ;;  %s2581_s10 = int_to_ptr.vmem [resolvable:$true] %s1745_s10 }
  0x1d   : > { %1980 = vmatprep.mubr.msk.bf16.mxu0 %vm411_vm0, %v2275_v9  ;;  %v2283_v17 = vld [vmem:[%s2468_s17 + $0x30] sm:$0xff]   ;;  %v2285_v19 = vld [vmem:[%s2468_s17 + $0x38] sm:$0xff]   ;;  %2029 = vmatpush3.bf16.msra.mxu0 %v2287_v20  ;;  %s2289_s20 = scalar_lea.vmem %s2581_s10, 512  ;;  %p2296_p0 = scmp.lt.s32.totalorder %s2581_s10, %s2294_s21 }
  0x1e   : > { %p2290_p11 = scmp.ne.s32.totalorder %s2581_s10, %s2289_s20  ;;  %p2297_p1 = scmp.lt.s32.totalorder %s2295_s22, %s2289_s20 }
  0x20   : > { %p2291_p12 = pnand %p2290_p11, %p2440_p5  ;;  %p2298_p2 = por %p2297_p1, %p2296_p0 }
  0x22   : > { %1963 = vmatmul.mubr.msk.bf16.gmra.mrb[4].mxu1 %vm411_vm0, %v2276_v10  ;;  %p2292_p13 = pneg %p2291_p12 }
  0x23   : > { %1981 = vmatmul.mubr.msk.bf16.gmra.mrb[4].mxu0 %vm411_vm0, %v2277_v11  ;;  %1966 = vmatprep.mubr.msk.bf16.mxu1 %vm411_vm0, %v2278_v12 }
  0x24   : > { %1984 = vmatprep.mubr.msk.bf16.mxu0 %vm411_vm0, %v2279_v13  ;;  %p2299_p3 = pnand %p2298_p2, %p2292_p13 }
  0x2a   : > { %1967 = vmatmul.mubr.msk.bf16.gmra.mrb[8].mxu1 %vm411_vm0, %v2280_v14 }
  0x2b   : > { %1985 = vmatmul.mubr.msk.bf16.gmra.mrb[8].mxu0 %vm411_vm0, %v2281_v15  ;;  %1970 = vmatprep.mubr.msk.bf16.mxu1 %vm411_vm0, %v2282_v16 }
  0x2c   : > { %1988 = vmatprep.mubr.msk.bf16.mxu0 %vm411_vm0, %v2283_v17 }
  0x32   : > { %1971 = vmatmul.mubr.msk.bf16.gmra.mrb[12].mxu1 %vm411_vm0, %v2284_v18 }
  0x33   : > { %1989 = vmatmul.mubr.msk.bf16.gmra.mrb[12].mxu0 %vm411_vm0, %v2285_v19  ;;  %1994 = vmatprep.mubr.msk.bf16.mxu1 %vm411_vm0, %v2269_v3 }
  0x3a   : > { %1995 = vmatmul.mubr.msk.bf16.vlgmr.msra.gmra.mrb[16].mxu1 %vm411_vm0, %v2272_v6 }
  0x3b   : > { %2011 = vmatpush3.bf16.msra.mxu1 %v2286_v4  ;;  %1998 = vmatprep.mubr.msk.bf16.mxu1 %vm411_vm0, %v2274_v8 }
  0x42   : > { %1999 = vmatmul.mubr.msk.bf16.gmra.mrb[20].mxu1 %vm411_vm0, %v2276_v10 }
  0x43   : > { %2002 = vmatprep.mubr.msk.bf16.mxu1 %vm411_vm0, %v2278_v12 }
  0x4a   : > { %2003 = vmatmul.mubr.msk.bf16.gmra.mrb[24].mxu1 %vm411_vm0, %v2280_v14 }
  0x4b   : > { %2006 = vmatprep.mubr.msk.bf16.mxu1 %vm411_vm0, %v2282_v16 }
  0x52   : > { %2007 = vmatmul.mubr.msk.bf16.gmra.mrb[28].mxu1 %vm411_vm0, %v2284_v18 }
  0x53   : > { %2012 = vmatprep.mubr.msk.bf16.mxu1 %vm411_vm0, %v2270_v5 }
  0x5a   : > { %2013 = vmatmul.mubr.msk.bf16.vlgmr.msra.gmra.mrb[16].mxu1 %vm411_vm0, %v2273_v7 }
  0x5b   : > { %2016 = vmatprep.mubr.msk.bf16.mxu1 %vm411_vm0, %v2275_v9 }
  0x62   : > { %2017 = vmatmul.mubr.msk.bf16.gmra.mrb[20].mxu1 %vm411_vm0, %v2277_v11 }
  0x63   : > { %2020 = vmatprep.mubr.msk.bf16.mxu1 %vm411_vm0, %v2279_v13 }
  0x6a   : > { %2021 = vmatmul.mubr.msk.bf16.gmra.mrb[24].mxu1 %vm411_vm0, %v2281_v15 }
  0x6b   : > { %2024 = vmatprep.mubr.msk.bf16.mxu1 %vm411_vm0, %v2283_v17 }
  0x72   : > { %2025 = vmatmul.mubr.msk.bf16.gmra.mrb[28].mxu1 %vm411_vm0, %v2285_v19 }
  0xed   : > { %v1960_v21 = vpop.f32.mrb[0].mxu1 }
  0xee   : > { %v1978_v22 = vpop.f32.mrb[0].mxu0  ;;  %v470_v23 = vpop.f32.mrb[1].mxu1 }
  0xef   : > { %v2524_v24 = vadd.f32 %v1978_v22, %v1960_v21  ;;  %v637_v25 = vpop.f32.mrb[1].mxu0  ;;  %v1961_v26 = vpop.f32.mrb[2].mxu1 }
  0xf0   : > { %v2526_v27 = vadd.f32 %v637_v25, %v470_v23  ;;  %v1979_v28 = vpop.f32.mrb[2].mxu0  ;;  %v473_v29 = vpop.f32.mrb[3].mxu1 }
  0xf1   : > { %v2528_v30 = vadd.f32 %v1979_v28, %v1961_v26  ;;  %v640_v31 = vpop.f32.mrb[3].mxu0  ;;  %v2288_v26 = vld [vmem:[%s2635_s6] sm:$0xff]  }
  0xf2   : > { %v2530_v32 = vadd.f32 %v640_v31, %v473_v29  ;;  %v2211_v33 = vpack.i.bf16 %v2524_v24, %v2526_v27  ;;  %2046 = vmatprep.subr.bf16.mxu0 %v2288_v26 }
  0xf4   : > { %v2213_v34 = vpack.i.bf16 %v2528_v30, %v2530_v32 }
  0xf5   : > { %v1964_v35 = vpop.f32.mrb[4].mxu1 }
  0xf6   : > { %v1982_v36 = vpop.f32.mrb[4].mxu0  ;;  %v486_v37 = vpop.f32.mrb[5].mxu1 }
  0xf7   : > { %v2536_v38 = vadd.f32 %v1982_v36, %v1964_v35  ;;  %v653_v39 = vpop.f32.mrb[5].mxu0  ;;  %v1965_v40 = vpop.f32.mrb[6].mxu1 }
  0xf8   : > { %v2538_v41 = vadd.f32 %v653_v39, %v486_v37  ;;  %v1983_v42 = vpop.f32.mrb[6].mxu0  ;;  %v489_v43 = vpop.f32.mrb[7].mxu1 }
  0xf9   : > { %v2540_v44 = vadd.f32 %v1983_v42, %v1965_v40  ;;  %v656_v45 = vpop.f32.mrb[7].mxu0 }
  0xfa   : > { %v2542_v46 = vadd.f32 %v656_v45, %v489_v43  ;;  %v2225_v47 = vpack.i.bf16 %v2536_v38, %v2538_v41 }
  0xfc   : > { %v2227_v48 = vpack.i.bf16 %v2540_v44, %v2542_v46 }
  0xfd   : > { %v1968_v49 = vpop.f32.mrb[8].mxu1 }
  0xfe   : > { %v1986_v50 = vpop.f32.mrb[8].mxu0  ;;  %v502_v51 = vpop.f32.mrb[9].mxu1 }
  0xff   : > { %v678_v52 = vadd.f32 %v1986_v50, %v1968_v49  ;;  %v669_v53 = vpop.f32.mrb[9].mxu0  ;;  %v1969_v54 = vpop.f32.mrb[10].mxu1 }
 0x100   : > { %v670_v55 = vadd.f32 %v669_v53, %v502_v51  ;;  %v1987_v56 = vpop.f32.mrb[10].mxu0  ;;  %v505_v57 = vpop.f32.mrb[11].mxu1 }
 0x101   : > { %v681_v58 = vadd.f32 %v1987_v56, %v1969_v54  ;;  %v672_v59 = vpop.f32.mrb[11].mxu0 }
 0x102   : > { %v673_v60 = vadd.f32 %v672_v59, %v505_v57  ;;  %v2239_v61 = vpack.i.bf16 %v678_v52, %v670_v55 }
 0x104   : > { %v2241_v62 = vpack.i.bf16 %v681_v58, %v673_v60 }
 0x105   : > { %v1972_v63 = vpop.f32.mrb[12].mxu1 }
 0x106   : > { %v1990_v0 = vpop.f32.mrb[12].mxu0  ;;  %v518_v1 = vpop.f32.mrb[13].mxu1 }
 0x107   : > { %v694_v2 = vadd.f32 %v1990_v0, %v1972_v63  ;;  %v685_v3 = vpop.f32.mrb[13].mxu0  ;;  %v1973_v4 = vpop.f32.mrb[14].mxu1 }
 0x108   : > { %v686_v5 = vadd.f32 %v685_v3, %v518_v1  ;;  %v1991_v6 = vpop.f32.mrb[14].mxu0  ;;  %v521_v7 = vpop.f32.mrb[15].mxu1 }
 0x109   : > { %v697_v8 = vadd.f32 %v1991_v6, %v1973_v4  ;;  %v688_v9 = vpop.f32.mrb[15].mxu0 }
 0x10a   : > { %v689_v10 = vadd.f32 %v688_v9, %v521_v7  ;;  %v2253_v11 = vpack.i.bf16 %v694_v2, %v686_v5 }
 0x10c   : > { %v2255_v12 = vpack.i.bf16 %v697_v8, %v689_v10 }
 0x12d   : > { %v2014_v13 = vpop.f32.mrb[16].mxu1 }
 0x12e   : > { %v847_v14 = vpop.f32.mrb[17].mxu1 }
 0x12f   : > { %v2015_v15 = vpop.f32.mrb[18].mxu1  ;;  %v2155_v16 = vpack.i.bf16 %v2014_v13, %v847_v14 }
 0x130   : > { %v850_v17 = vpop.f32.mrb[19].mxu1 }
 0x131   : > { %v2157_v18 = vpack.i.bf16 %v2015_v15, %v850_v17  ;;  %2156 = vxpose.xlu0.b32.start [1/2] (short) (narrow) %v2155_v16, 16 }
 0x135   : > { %2158 = vxpose.xlu0.b32.end [2/2] (short) (narrow) %v2157_v18, 16  ;;  %v2018_v19 = vpop.f32.mrb[20].mxu1 }
 0x136   : > { %v863_v20 = vpop.f32.mrb[21].mxu1 }
 0x137   : > { %v2019_v21 = vpop.f32.mrb[22].mxu1  ;;  %v2169_v22 = vpack.i.bf16 %v2018_v19, %v863_v20 }
 0x138   : > { %v866_v23 = vpop.f32.mrb[23].mxu1 }
 0x139   : > { %v2171_v25 = vpack.i.bf16 %v2019_v21, %v866_v23  ;;  %2170 = vxpose.xlu1.b32.start [1/2] (short) (narrow) %v2169_v22, 16 }
 0x13d   : > { %2172 = vxpose.xlu1.b32.end [2/2] (short) (narrow) %v2171_v25, 16  ;;  %v2022_v28 = vpop.f32.mrb[24].mxu1 }
 0x13e   : > { %v879_v29 = vpop.f32.mrb[25].mxu1 }
 0x13f   : > { %v2183_v31 = vpack.i.bf16 %v2022_v28, %v879_v29  ;;  %v2023_v35 = vpop.f32.mrb[26].mxu1 }
 0x140   : > { %v882_v36 = vpop.f32.mrb[27].mxu1 }
 0x141   : > { %v2185_v37 = vpack.i.bf16 %v2023_v35, %v882_v36  ;;  %2184 = vxpose.xlu0.b32.start [1/2] (short) (narrow) %v2183_v31, 16 }
 0x145   : > { %2186 = vxpose.xlu0.b32.end [2/2] (short) (narrow) %v2185_v37, 16  ;;  %v2026_v39 = vpop.f32.mrb[28].mxu1 }
 0x146   : > { %v895_v40 = vpop.f32.mrb[29].mxu1 }
 0x147   : > { %v2197_v42 = vpack.i.bf16 %v2026_v39, %v895_v40  ;;  %v2027_v43 = vpop.f32.mrb[30].mxu1 }
 0x148   : > { %v898_v45 = vpop.f32.mrb[31].mxu1 }
 0x149   : > { %v2199_v49 = vpack.i.bf16 %v2027_v43, %v898_v45  ;;  %2198 = vxpose.xlu1.b32.start [1/2] (short) (narrow) %v2197_v42, 16  ;;  %2212 = vxpose.xlu0.b32.start [1/2] (short) (narrow) %v2211_v33, 16 }
 0x14d   : > { %2200 = vxpose.xlu1.b32.end [2/2] (short) (narrow) %v2199_v49, 16  ;;  %2214 = vxpose.xlu0.b32.end [2/2] (short) (narrow) %v2213_v34, 16 }
 0x151   : > { %2226 = vxpose.xlu1.b32.start [1/2] (short) (narrow) %v2225_v47, 16  ;;  %2240 = vxpose.xlu0.b32.start [1/2] (short) (narrow) %v2239_v61, 16 }
 0x155   : > { %2228 = vxpose.xlu1.b32.end [2/2] (short) (narrow) %v2227_v48, 16  ;;  %2242 = vxpose.xlu0.b32.end [2/2] (short) (narrow) %v2241_v62, 16 }
 0x159   : > { %2254 = vxpose.xlu1.b32.start [1/2] (short) (narrow) %v2253_v11, 16 }
 0x15d   : > { %2256 = vxpose.xlu1.b32.end [2/2] (short) (narrow) %v2255_v12, 16 }
 0x1b1   : > { %v2159_v50 = vpop.trf.xlu0 }
 0x1b2   : > { %v2163_v24 = vunpack.i.h.bf16 %v2159_v50  ;;  %v2160_v27 = vunpack.i.l.bf16 %v2159_v50 }
 0x1b5   : > { %v2164_v33 = vpop.trf.xlu0 }
 0x1b6   : > { %v2168_v51 = vunpack.i.h.bf16 %v2164_v33  ;;  %v2165_v52 = vunpack.i.l.bf16 %v2164_v33 }
 0x1b8   : > { %v1431_v30 = vpack.c.bf16 %v2168_v51, %v2163_v24  ;;  %v1430_v32 = vpack.c.bf16 %v2165_v52, %v2160_v27 }
 0x1b9   : > { %v2173_v34 = vpop.trf.xlu1 }
 0x1ba   : > { %2030 = vmatprep.mubr.msk.bf16.mxu0 %vm411_vm0, %v1430_v32  ;;  %v2177_v38 = vunpack.i.h.bf16 %v2173_v34  ;;  %v2174_v41 = vunpack.i.l.bf16 %v2173_v34 }
 0x1bb   : > { %2031 = vmatmul.mubr.msk.bf16.vlgmr.msra.gmra.mrb[16].mxu0 %vm411_vm0, %v1431_v30 }
 0x1bc   : > { %2047 = vmatpush3.bf16.msra.mxu0 %v2288_v26 }
 0x1bd   : > { %v2178_v44 = vpop.trf.xlu1 }
 0x1be   : > { %v2182_v46 = vunpack.i.h.bf16 %v2178_v44  ;;  %v2179_v47 = vunpack.i.l.bf16 %v2178_v44 }
 0x1c0   : > { %v1432_v48 = vpack.c.bf16 %v2179_v47, %v2174_v41  ;;  %v1433_v53 = vpack.c.bf16 %v2182_v46, %v2177_v38 }
 0x1c1   : > { %v2187_v54 = vpop.trf.xlu0 }
 0x1c2   : > { %2034 = vmatprep.mubr.msk.bf16.mxu0 %vm411_vm0, %v1432_v48  ;;  %v2191_v55 = vunpack.i.h.bf16 %v2187_v54  ;;  %v2188_v56 = vunpack.i.l.bf16 %v2187_v54 }
 0x1c3   : > { %2035 = vmatmul.mubr.msk.bf16.gmra.mrb[20].mxu0 %vm411_vm0, %v1433_v53 }
 0x1c5   : > { %v2192_v57 = vpop.trf.xlu0 }
 0x1c6   : > { %v2196_v58 = vunpack.i.h.bf16 %v2192_v57  ;;  %v2193_v59 = vunpack.i.l.bf16 %v2192_v57 }
 0x1c8   : > { %v1434_v60 = vpack.c.bf16 %v2193_v59, %v2188_v56  ;;  %v1435_v61 = vpack.c.bf16 %v2196_v58, %v2191_v55 }
 0x1c9   : > { %v2201_v62 = vpop.trf.xlu1  ;;  %v2215_v63 = vpop.trf.xlu0 }
 0x1ca   : > { %2038 = vmatprep.mubr.msk.bf16.mxu0 %vm411_vm0, %v1434_v60  ;;  %v2205_v0 = vunpack.i.h.bf16 %v2201_v62  ;;  %v2202_v1 = vunpack.i.l.bf16 %v2201_v62  ;;  %v2216_v3 = vunpack.i.l.bf16 %v2215_v63  ;;  %v2219_v14 = vunpack.i.h.bf16 %v2215_v63 }
 0x1cb   : > { %2039 = vmatmul.mubr.msk.bf16.gmra.mrb[24].mxu0 %vm411_vm0, %v1435_v61 }
 0x1cd   : > { %v2206_v2 = vpop.trf.xlu1  ;;  %v2220_v4 = vpop.trf.xlu0 }
 0x1ce   : > { %v2210_v5 = vunpack.i.h.bf16 %v2206_v2  ;;  %v2207_v6 = vunpack.i.l.bf16 %v2206_v2  ;;  %v2221_v7 = vunpack.i.l.bf16 %v2220_v4  ;;  %v2224_v15 = vunpack.i.h.bf16 %v2220_v4 }
 0x1d0   : > { %v1436_v8 = vpack.c.bf16 %v2207_v6, %v2202_v1  ;;  %v1437_v9 = vpack.c.bf16 %v2210_v5, %v2205_v0  ;;  %v1422_v10 = vpack.c.bf16 %v2221_v7, %v2216_v3  ;;  %v1423_v20 = vpack.c.bf16 %v2224_v15, %v2219_v14 }
 0x1d1   : > { %v2229_v11 = vpop.trf.xlu1  ;;  %v2243_v12 = vpop.trf.xlu0 }
 0x1d2   : > { %2042 = vmatprep.mubr.msk.bf16.mxu0 %vm411_vm0, %v1436_v8  ;;  %v2230_v13 = vunpack.i.l.bf16 %v2229_v11  ;;  %v2233_v22 = vunpack.i.h.bf16 %v2229_v11  ;;  %v2244_v25 = vunpack.i.l.bf16 %v2243_v12  ;;  %v2247_v35 = vunpack.i.h.bf16 %v2243_v12 }
 0x1d3   : > { %2043 = vmatmul.mubr.msk.bf16.gmra.mrb[28].mxu0 %vm411_vm0, %v1437_v9 }
 0x1d4   : > { %2048 = vmatprep.mubr.msk.bf16.mxu0 %vm411_vm0, %v1422_v10 }
 0x1d5   : > { %v2234_v16 = vpop.trf.xlu1  ;;  %v2248_v18 = vpop.trf.xlu0 }
 0x1d6   : > { %v2235_v17 = vunpack.i.l.bf16 %v2234_v16  ;;  %v2238_v23 = vunpack.i.h.bf16 %v2234_v16  ;;  %v2249_v26 = vunpack.i.l.bf16 %v2248_v18  ;;  %v2252_v36 = vunpack.i.h.bf16 %v2248_v18 }
 0x1d8   : > { %v1424_v19 = vpack.c.bf16 %v2235_v17, %v2230_v13  ;;  %v1425_v29 = vpack.c.bf16 %v2238_v23, %v2233_v22  ;;  %v1426_v31 = vpack.c.bf16 %v2249_v26, %v2244_v25  ;;  %v1427_v40 = vpack.c.bf16 %v2252_v36, %v2247_v35 }
 0x1d9   : > { %v2257_v21 = vpop.trf.xlu1 }
 0x1da   : > { %v2258_v37 = vunpack.i.l.bf16 %v2257_v21  ;;  %v2261_v43 = vunpack.i.h.bf16 %v2257_v21 }
 0x1db   : > { %2049 = vmatmul.mubr.msk.bf16.vlgmr.msra.gmra.mrb[16].mxu0 %vm411_vm0, %v1423_v20 }
 0x1dc   : > { %2052 = vmatprep.mubr.msk.bf16.mxu0 %vm411_vm0, %v1424_v19 }
 0x1dd   : > { %v2262_v28 = vpop.trf.xlu1 }
 0x1de   : > { %v2263_v39 = vunpack.i.l.bf16 %v2262_v28  ;;  %v2266_v45 = vunpack.i.h.bf16 %v2262_v28 }
 0x1e0   : > { %v1428_v42 = vpack.c.bf16 %v2263_v39, %v2258_v37  ;;  %v1429_v49 = vpack.c.bf16 %v2266_v45, %v2261_v43 }
 0x1e3   : > { %2053 = vmatmul.mubr.msk.bf16.gmra.mrb[20].mxu0 %vm411_vm0, %v1425_v29 }
 0x1e4   : > { %2056 = vmatprep.mubr.msk.bf16.mxu0 %vm411_vm0, %v1426_v31 }
 0x1eb   : > { %2057 = vmatmul.mubr.msk.bf16.gmra.mrb[24].mxu0 %vm411_vm0, %v1427_v40 }
 0x1ec   : > { %2060 = vmatprep.mubr.msk.bf16.mxu0 %vm411_vm0, %v1428_v42 }
 0x1f3   : > { %2061 = vmatmul.mubr.msk.bf16.gmra.mrb[28].mxu0 %vm411_vm0, %v1429_v49 }
 0x2ae   : > { %v2050_v50 = vpop.f32.mrb[16].mxu0 }
 0x2af   : > { %v1633_v24 = vpop.f32.mrb[17].mxu0 }
 0x2b0   : > { %1696 = vxpose.xlu0.b32.start [1/16] (narrow) %v1633_v24, 32  ;;  %v2051_v27 = vpop.f32.mrb[18].mxu0 }
 0x2b1   : > { %v1636_v33 = vpop.f32.mrb[19].mxu0 }
 0x2b4   : > { %1697 = vxpose.xlu0.b32.cont [2/16] (narrow) %v1636_v33, 32 }
 0x2b6   : > { %v2054_v51 = vpop.f32.mrb[20].mxu0 }
 0x2b7   : > { %v1649_v52 = vpop.f32.mrb[21].mxu0 }
 0x2b8   : > { %1698 = vxpose.xlu0.b32.cont [3/16] (narrow) %v2050_v50, 32  ;;  %v2055_v30 = vpop.f32.mrb[22].mxu0 }
 0x2b9   : > { %v1652_v32 = vpop.f32.mrb[23].mxu0 }
 0x2bc   : > { %1699 = vxpose.xlu0.b32.cont [4/16] (narrow) %v2051_v27, 32 }
 0x2be   : > { %v2058_v34 = vpop.f32.mrb[24].mxu0 }
 0x2bf   : > { %v1665_v38 = vpop.f32.mrb[25].mxu0 }
 0x2c0   : > { %1700 = vxpose.xlu0.b32.cont [5/16] (narrow) %v1649_v52, 32  ;;  %v2059_v41 = vpop.f32.mrb[26].mxu0 }
 0x2c1   : > { %v1668_v44 = vpop.f32.mrb[27].mxu0 }
 0x2c4   : > { %1701 = vxpose.xlu0.b32.cont [6/16] (narrow) %v1652_v32, 32 }
 0x2c6   : > { %v2062_v46 = vpop.f32.mrb[28].mxu0 }
 0x2c7   : > { %v1681_v47 = vpop.f32.mrb[29].mxu0 }
 0x2c8   : > { %1702 = vxpose.xlu0.b32.cont [7/16] (narrow) %v2054_v51, 32  ;;  %v2063_v48 = vpop.f32.mrb[30].mxu0 }
 0x2c9   : > { %v1684_v53 = vpop.f32.mrb[31].mxu0 }
 0x2cc   : > { %1703 = vxpose.xlu0.b32.cont [8/16] (narrow) %v2055_v30, 32 }
 0x2d0   : > { %1704 = vxpose.xlu0.b32.cont [9/16] (narrow) %v1665_v38, 32 }
 0x2d4   : > { %1705 = vxpose.xlu0.b32.cont [10/16] (narrow) %v1668_v44, 32 }
 0x2d8   : > { %1706 = vxpose.xlu0.b32.cont [11/16] (narrow) %v2058_v34, 32 }
 0x2dc   : > { %1707 = vxpose.xlu0.b32.cont [12/16] (narrow) %v2059_v41, 32 }
 0x2e0   : > { %1708 = vxpose.xlu0.b32.cont [13/16] (narrow) %v1681_v47, 32 }
 0x2e4   : > { %1709 = vxpose.xlu0.b32.cont [14/16] (narrow) %v1684_v53, 32 }
 0x2e8   : > { %1710 = vxpose.xlu0.b32.cont [15/16] (narrow) %v2062_v46, 32 }
 0x2ec   : > { %1711 = vxpose.xlu0.b32.end [16/16] (narrow) %v2063_v48, 32 }
 0x330   : > { %v1712_v54 = vpop.trf.xlu0 }
 0x331   : > { %1728 = vst [vmem:[%s315_s26] sm:$0xff] %v1712_v54 }
 0x334   : > { %v1713_v55 = vpop.trf.xlu0 }
 0x335   : > { %1729 = vst [vmem:[%s315_s26 + $0x8] sm:$0xff] %v1713_v55 }
 0x338   : > { %v1714_v56 = vpop.trf.xlu0 }
 0x339   : > { %1730 = vst [vmem:[%s315_s26 + $0x10] sm:$0xff] %v1714_v56 }
 0x33c   : > { %v1715_v57 = vpop.trf.xlu0 }
 0x33d   : > { %1731 = vst [vmem:[%s315_s26 + $0x18] sm:$0xff] %v1715_v57 }
 0x33e   : > { %2302 = shalt.err (!%p2299_p3)
}
 0x33f   : > { %s2303_s23 = scalar_lea.hbm %s2586_s18, 512  ;;  %s2307_s26 = scalar_lea.hbm %s2637_s8, 1024 }
 0x340   : > { %p2304_p4 = scmp.ne.s32.totalorder %s2586_s18, %s2303_s23  ;;  %p2308_p9 = scmp.lt.u32.totalorder %s2586_s18, %s2637_s8 }
 0x341   : > { %p2309_p10 = scmp.lt.u32.totalorder %s2307_s26, %s2303_s23  ;;  %p2311_p12 = scmp.lt.u32.totalorder %s2303_s23, %s2586_s18 }
 0x342   : > { %p2305_p7 = pnand %p2304_p4, %p2440_p5 }
 0x343   : > { %p2310_p11 = por %p2309_p10, %p2308_p9 }
 0x344   : > { %p2306_p8 = pneg %p2305_p7 }
 0x345   : > { %p2312_p13 = por %p2311_p12, %p2310_p11 }
 0x347   : > { %p2313_p0 = pnand %p2312_p13, %p2306_p8 }
 0x349   : > { %2316 = shalt.err (!%p2313_p0)
}
 0x34a   : > { %s2354_s17 = smov 128   ;;  %s2355_s20 = smov 256  }
 0x34b   : > { %s2356_s9 = smov 8  }
 0x34c   : > { %2112 = dma.vmem_to_hbm [thread:$0]  (%p2440_p5), %s2581_s10, 512, %s2586_s18, %s2588_s19, %s2354_s17, %s2355_s20, %s2356_s9  }
 0x34d PF: > { %p2118_p1 = scmp.ge.s32.totalorder %s2351_s30, 2  ;;  %s1760_s21 = sand.u32 1, %s2339_s27  }
 0x34e   : > { %s1761_s22 = scalar_lea.sflag [#allocation3], %s1760_s21 }
 0x34f   : > { %p2115_p2 = pnand %p2118_p1, %p2444_p6 }
 0x351   : > { %2334 = dma.done.wait (!%p2115_p2), %s1761_s22, 512  }
 0x352   : > { %2336 = vsyncadd (!%p2115_p2), %s1761_s22, 4294966784  ;;  %p18_p3 = scmp.ge.s32.totalorder %s2427_s11, 4   ;;  %s2640_s27 = smov %s2343_s28 }
 0x353   : > { %s2641_s28 = smov %s2347_s29  ;;  %s2642_s29 = smov %s2438_s14 }
 0x354   : > { %s2643_s30 = smov %s2427_s11  ;;  %20 = sbr.rel (!%p18_p3) target bundleno = 3 (0x3), region = 90 }
 0x35b   :  { %1766 = vsyncpa [#allocation3], 1 }
 0x35c   :  { %1768 = vsyncpa [#allocation3 + $0x1], 1 }

</bundles_post_ra>
